<compile_context>
chip_gen: v7x
topology: tpu7x:2x2x1
jax: 0.10.0
libtpu: 0.0.40
codegen_flags: <defaults>
</compile_context>

<pallas_src>
import jax
import jax.numpy as jnp
from jax.experimental import pallas as pl
from jax.experimental.pallas import tpu as pltpu


# ---------------------------------------------------------------------------
# Kernel A: per-point packed table  [q | k | v | coord | 0]  (lane width 128)
# ---------------------------------------------------------------------------
def qkv_kernel(feat_ref, coord_ref, fc1_w, fc1_b, qkv_w, qkv_b, out_ref):
    f32 = jnp.float32
    C = fc1_w.shape[0]

    # fc1 -> BN -> ReLU   (BN folded into fc1_w / fc1_b)
    feat = jnp.maximum(
        jnp.dot(feat_ref[...], fc1_w[...], preferred_element_type=f32)
        + fc1_b[...], 0.0)

    # fused q|k|v projection (BNs folded); ReLU on q and k columns only
    qkv = (jnp.dot(feat, qkv_w[...], preferred_element_type=f32)
           + qkv_b[...])                                        # (TN, 3C)
    col = jax.lax.broadcasted_iota(jnp.int32, qkv.shape, 1)
    qkv = jnp.where(col < 2 * C, jnp.maximum(qkv, 0.0), qkv)

    out_ref[...] = jnp.zeros_like(out_ref)
    out_ref[:, 0:3 * C] = qkv
    out_ref[:, 3 * C:3 * C + 3] = coord_ref[...]


# ---------------------------------------------------------------------------
# Kernel B: grouped vector attention + post-attention path (per query tile)
# ---------------------------------------------------------------------------
def attn_kernel(qkvc_ref, qkvc_all_ref, idx_ref, feat0_ref,
                pb1_w, pb1_b, pb2_w, pb2_b,
                we1_w, we1_b, we2_w, we2_b,
                bn2_s, bn2_b, fc3_w, fc3_b, out_ref):
    f32 = jnp.float32
    TN, C = feat0_ref.shape
    _, S = idx_ref.shape
    N, W = qkvc_all_ref.shape
    G = we1_w.shape[1]

    tile = qkvc_ref[...]                       # (TN, W)
    q = tile[:, 0:C]                           # (TN, C)  (already ReLU'd)
    coord_c = tile[:, 3 * C:3 * C + 3]         # (TN, 3)
    idx = idx_ref[...]                         # (TN, S)

    # ---- neighbor gather: ONE one-hot matmul (idx == -1 -> zero row) -------
    onehot = (idx.reshape(TN * S, 1) ==
              jax.lax.broadcasted_iota(jnp.int32, (TN * S, N), 1)).astype(f32)
    g_all = jnp.dot(onehot, qkvc_all_ref[...],
                    preferred_element_type=f32)                 # (TN*S, W)

    mask = (idx >= 0).astype(f32)                               # (TN, S)
    mask3 = mask[:, :, None]                                    # (TN, S, 1)

    g_xyz = g_all[:, 3 * C:3 * C + 3].reshape(TN, S, 3)
    pos = ((g_xyz - coord_c[:, None, :]) * mask3).reshape(TN * S, 3)

    # ---- linear_p_bias: (3 -> C) on the VPU (3 FMAs) -> ReLU -> (C -> C) ----
    pw = pb1_w[...]                                             # (3, C) folded
    peb = jnp.maximum(pos[:, 0:1] * pw[0:1, :]
                      + pos[:, 1:2] * pw[1:2, :]
                      + pos[:, 2:3] * pw[2:3, :]
                      + pb1_b[...], 0.0)                        # (TN*S, C)
    peb = (jnp.dot(peb, pb2_w[...], preferred_element_type=f32)
           + pb2_b[...])                                        # (TN*S, C)

    g_key = g_all[:, C:2 * C]
    rel = (g_key.reshape(TN, S, C) - q[:, None, :]).reshape(TN * S, C) + peb
    g_val = g_all[:, 2 * C:3 * C] + peb                         # (TN*S, C)

    # ---- weight encoding: (C -> G) on MXU, ReLU, (G -> C) on VPU -----------
    # second layer has the group->channel expansion folded in (we2_w @ expand)
    wh = jnp.maximum(
        jnp.dot(rel, we1_w[...], preferred_element_type=f32) + we1_b[...],
        0.0)                                                    # (TN*S, G)
    w2 = we2_w[...]                                             # (G, C)
    w = we2_b[...] + wh[:, 0:1] * w2[0:1, :]
    for g in range(1, G):
        w = w + wh[:, g:g + 1] * w2[g:g + 1, :]
    w = w.reshape(TN, S, C)

    # ---- softmax over neighbors (S), then mask padded neighbors ------------
    w = w - jnp.max(w, axis=1, keepdims=True)
    w = jnp.exp(w)
    w = w * pl.reciprocal(jnp.sum(w, axis=1, keepdims=True), approx=True)
    w = w * mask3

    attn = jnp.sum(g_val.reshape(TN, S, C) * w, axis=1)         # (TN, C)

    # ---- BN2 -> ReLU -> fc3 (BN3 folded) -> residual -> ReLU ----------------
    feat = jnp.maximum(attn * bn2_s[...] + bn2_b[...], 0.0)
    feat = jnp.dot(feat, fc3_w[...], preferred_element_type=f32) + fc3_b[...]
    out_ref[...] = jnp.maximum(feat0_ref[...] + feat, 0.0)


# ---------------------------------------------------------------------------
# Parameters (deterministic, "raw" PyTorch-style) and host-side folding
# ---------------------------------------------------------------------------
def make_params(key, C, G):
    """Deterministic parameter init. Linear weights stored as (in, out)."""
    ks = iter(jax.random.split(key, 64))

    def lin_w(i, o):
        return (jax.random.normal(next(ks), (i, o), jnp.float32)
                * (1.0 / jnp.sqrt(i)))

    def lin_b(o):
        return jax.random.normal(next(ks), (1, o), jnp.float32) * 0.02

    def bn(o):  # folded eval-mode BN: scale, shift
        s = 0.5 + jax.random.uniform(next(ks), (1, o), jnp.float32)
        b = jax.random.normal(next(ks), (1, o), jnp.float32) * 0.1
        return s, b

    p = {}
    p["fc1_w"] = lin_w(C, C)
    p["bn1_s"], p["bn1_b"] = bn(C)
    p["qw"], p["qb"] = lin_w(C, C), lin_b(C)
    p["qbn_s"], p["qbn_b"] = bn(C)
    p["kw"], p["kb"] = lin_w(C, C), lin_b(C)
    p["kbn_s"], p["kbn_b"] = bn(C)
    p["vw"], p["vb"] = lin_w(C, C), lin_b(C)
    p["pb1_w"], p["pb1_b"] = lin_w(3, C), lin_b(C)
    p["pbn_s"], p["pbn_b"] = bn(C)
    p["pb2_w"], p["pb2_b"] = lin_w(C, C), lin_b(C)
    p["we1_w"], p["we1_b"] = lin_w(C, G), lin_b(G)
    p["webn_s"], p["webn_b"] = bn(G)
    p["we2_w"], p["we2_b"] = lin_w(G, G), lin_b(G)
    p["bn2_s"], p["bn2_b"] = bn(C)
    p["fc3_w"] = lin_w(C, C)
    p["bn3_s"], p["bn3_b"] = bn(C)
    return p


def fold_params(p, C, G):
    """Fold eval-mode BN + biases into weights; fold group expansion into we2."""
    Cg = C // G
    expand = (jnp.arange(C)[None, :] // Cg ==
              jnp.arange(G)[:, None]).astype(jnp.float32)       # (G, C)

    f = {}
    f["fc1_w"] = p["fc1_w"] * p["bn1_s"]
    f["fc1_b"] = p["bn1_b"]
    qw = p["qw"] * p["qbn_s"]
    qb = p["qb"] * p["qbn_s"] + p["qbn_b"]
    kw = p["kw"] * p["kbn_s"]
    kb = p["kb"] * p["kbn_s"] + p["kbn_b"]
    f["qkv_w"] = jnp.concatenate([qw, kw, p["vw"]], axis=1)     # (C, 3C)
    f["qkv_b"] = jnp.concatenate([qb, kb, p["vb"]], axis=1)     # (1, 3C)
    f["pb1_w"] = p["pb1_w"] * p["pbn_s"]                        # (3, C)
    f["pb1_b"] = p["pb1_b"] * p["pbn_s"] + p["pbn_b"]
    f["pb2_w"] = p["pb2_w"]
    f["pb2_b"] = p["pb2_b"]
    f["we1_w"] = p["we1_w"] * p["webn_s"]                       # (C, G)
    f["we1_b"] = p["we1_b"] * p["webn_s"] + p["webn_b"]
    f["we2_w"] = jnp.dot(p["we2_w"], expand)                    # (G, C)
    f["we2_b"] = jnp.dot(p["we2_b"], expand)                    # (1, C)
    f["bn2_s"] = p["bn2_s"]
    f["bn2_b"] = p["bn2_b"]
    f["fc3_w"] = p["fc3_w"] * p["bn3_s"]
    f["fc3_b"] = p["bn3_b"]
    return f


# ---------------------------------------------------------------------------
# Forward wrapper
# ---------------------------------------------------------------------------
def block_forward(points, reference_index, params, groups, tile_n=None):
    coord, feat, offset = points
    N, C = feat.shape
    S = reference_index.shape[1]
    G = groups
    W = max(128, ((3 * C + 3 + 127) // 128) * 128)   # packed-table lane width

    fp = fold_params(params, C, G)
    idx = reference_index.astype(jnp.int32)

    if tile_n is None:
        tile_n = N if N <= 128 else 128
    assert N % tile_n == 0 and tile_n % 8 == 0

    full = lambda i: (0, 0)
    row = lambda i: (i, 0)

    # ---- Kernel A: packed [q|k|v|coord|0] table over all points ------------
    qkvc = pl.pallas_call(
        qkv_kernel,
        out_shape=jax.ShapeDtypeStruct((N, W), jnp.float32),
        grid=(N // tile_n,),
        in_specs=[
            pl.BlockSpec((tile_n, C), row),        # feat tile
            pl.BlockSpec((tile_n, 3), row),        # coord tile
            pl.BlockSpec((C, C), full),            # fc1 (folded)
            pl.BlockSpec((1, C), full),
            pl.BlockSpec((C, 3 * C), full),        # fused qkv (folded)
            pl.BlockSpec((1, 3 * C), full),
        ],
        out_specs=pl.BlockSpec((tile_n, W), row),
        compiler_params=pltpu.CompilerParams(
            dimension_semantics=("parallel",)),
    )(feat, coord, fp["fc1_w"], fp["fc1_b"], fp["qkv_w"], fp["qkv_b"])

    # ---- Kernel B: attention + post path, tiled over query rows ------------
    est = 4 * (2 * N * W                     # full packed table (dbl-buffered)
               + tile_n * S * N              # one-hot
               + 2 * tile_n * S * W          # gathered rows
               + 12 * tile_n * S * C         # misc (TN*S, C) intermediates
               + 8 * tile_n * (W + C))
    vmem_bytes = int(min(max(2 * est, 32 * 1024 * 1024), 48 * 1024 * 1024))

    out_feat = pl.pallas_call(
        attn_kernel,
        out_shape=jax.ShapeDtypeStruct((N, C), jnp.float32),
        grid=(N // tile_n,),
        in_specs=[
            pl.BlockSpec((tile_n, W), row),        # packed table, query tile
            pl.BlockSpec((N, W), full),            # packed table, full (gather)
            pl.BlockSpec((tile_n, S), row),        # reference_index tile
            pl.BlockSpec((tile_n, C), row),        # original feat (residual)
            pl.BlockSpec((3, C), full),            # pb1 (folded)
            pl.BlockSpec((1, C), full),
            pl.BlockSpec((C, C), full),            # pb2
            pl.BlockSpec((1, C), full),
            pl.BlockSpec((C, G), full),            # we1 (folded)
            pl.BlockSpec((1, G), full),
            pl.BlockSpec((G, C), full),            # we2 (expand folded)
            pl.BlockSpec((1, C), full),
            pl.BlockSpec((1, C), full),            # bn2 scale
            pl.BlockSpec((1, C), full),            # bn2 shift
            pl.BlockSpec((C, C), full),            # fc3 (bn3 folded)
            pl.BlockSpec((1, C), full),
        ],
        out_specs=pl.BlockSpec((tile_n, C), row),
        compiler_params=pltpu.CompilerParams(
            dimension_semantics=("parallel",),
            vmem_limit_bytes=vmem_bytes),
    )(qkvc, qkvc, idx, feat,
      fp["pb1_w"], fp["pb1_b"], fp["pb2_w"], fp["pb2_b"],
      fp["we1_w"], fp["we1_b"], fp["we2_w"], fp["we2_b"],
      fp["bn2_s"], fp["bn2_b"], fp["fc3_w"], fp["fc3_b"])

    return [coord, out_feat, offset]


if __name__ == "__main__":
    N, C, G, S = 64, 32, 4, 8   # points, embed_channels, groups, neighbors

    key = jax.random.PRNGKey(0)
    k_feat, k_coord, k_idx, k_pad, k_par = jax.random.split(key, 5)

    feat = jax.random.normal(k_feat, (N, C), jnp.float32)
    coord = jax.random.uniform(k_coord, (N, 3), jnp.float32)
    offset = jnp.array([N], jnp.int32)

    ref_idx = jax.random.randint(k_idx, (N, S), 0, N, dtype=jnp.int32)
    pad = jax.random.uniform(k_pad, (N, S)) < 0.15          # some padded neighbors
    ref_idx = jnp.where(pad, -1, ref_idx)

    params = make_params(k_par, C, G)

    coord_o, feat_o, offset_o = block_forward([coord, feat, offset], ref_idx,
                                              params, groups=G, tile_n=32)
    feat_o = jax.block_until_ready(feat_o)

    assert feat_o.shape == (N, C)
    assert bool(jnp.all(jnp.isfinite(feat_o)))
    print("KERNEL_OK")
</pallas_src>

<mosaic_0001>
module attributes {stable_mosaic.version = 11 : i64} {
  func.func @qkv_kernel(%arg0: i32, %arg1: memref<32x32xf32, #tpu.memory_space<vmem>>, %arg2: memref<32x3xf32, #tpu.memory_space<vmem>>, %arg3: memref<32x32xf32, #tpu.memory_space<vmem>>, %arg4: memref<1x32xf32, #tpu.memory_space<vmem>>, %arg5: memref<32x96xf32, #tpu.memory_space<vmem>>, %arg6: memref<1x96xf32, #tpu.memory_space<vmem>>, %arg7: memref<32x128xf32, #tpu.memory_space<vmem>>) attributes {dimension_semantics = [#tpu.dimension_semantics<parallel>], iteration_bounds = array<i64: 2>, scalar_prefetch = 0 : i64, scratch_operands = 0 : i64, tpu.core_type = #tpu.core_type<tc>, window_params = [{transform_indices = @transform_0, window_bounds = array<i64: 32, 32>}, {transform_indices = @transform_1, window_bounds = array<i64: 32, 3>}, {pipeline_mode = #tpu.pipeline_mode<synchronous>, transform_indices = @transform_2, window_bounds = array<i64: 32, 32>}, {pipeline_mode = #tpu.pipeline_mode<synchronous>, transform_indices = @transform_3, window_bounds = array<i64: 1, 32>}, {pipeline_mode = #tpu.pipeline_mode<synchronous>, transform_indices = @transform_4, window_bounds = array<i64: 32, 96>}, {pipeline_mode = #tpu.pipeline_mode<synchronous>, transform_indices = @transform_5, window_bounds = array<i64: 1, 96>}, {transform_indices = @transform_6, window_bounds = array<i64: 32, 128>}]} {
    %c0 = arith.constant 0 : index
    %c0_0 = arith.constant 0 : index
    %0 = vector.load %arg1[%c0, %c0_0] : memref<32x32xf32, #tpu.memory_space<vmem>>, vector<32x32xf32>
    %c0_1 = arith.constant 0 : index
    %c0_2 = arith.constant 0 : index
    %1 = vector.load %arg3[%c0_1, %c0_2] : memref<32x32xf32, #tpu.memory_space<vmem>>, vector<32x32xf32>
    %cst = arith.constant dense<0.000000e+00> : vector<32x32xf32>
    %2 = tpu.matmul %0, %1, %cst {dimension_numbers = #tpu.dot_dimension_numbers<[1], [0], [0], [1], [0, 0, 1, 1], [], []>} : vector<32x32xf32>, vector<32x32xf32>, vector<32x32xf32> -> vector<32x32xf32>
    %c0_3 = arith.constant 0 : index
    %c0_4 = arith.constant 0 : index
    %3 = vector.load %arg4[%c0_3, %c0_4] : memref<1x32xf32, #tpu.memory_space<vmem>>, vector<1x32xf32>
    %4 = vector.broadcast %3 : vector<1x32xf32> to vector<32x32xf32>
    %5 = arith.addf %2, %4 : vector<32x32xf32>
    %cst_5 = arith.constant 0.000000e+00 : f32
    %6 = vector.broadcast %cst_5 : f32 to vector<32x32xf32>
    %7 = arith.maximumf %5, %6 : vector<32x32xf32>
    %c0_6 = arith.constant 0 : index
    %c0_7 = arith.constant 0 : index
    %8 = vector.load %arg5[%c0_6, %c0_7] : memref<32x96xf32, #tpu.memory_space<vmem>>, vector<32x96xf32>
    %cst_8 = arith.constant dense<0.000000e+00> : vector<32x96xf32>
    %9 = tpu.matmul %7, %8, %cst_8 {dimension_numbers = #tpu.dot_dimension_numbers<[1], [0], [0], [1], [0, 0, 1, 1], [], []>} : vector<32x32xf32>, vector<32x96xf32>, vector<32x96xf32> -> vector<32x96xf32>
    %c0_9 = arith.constant 0 : index
    %c0_10 = arith.constant 0 : index
    %10 = vector.load %arg6[%c0_9, %c0_10] : memref<1x96xf32, #tpu.memory_space<vmem>>, vector<1x96xf32>
    %11 = vector.broadcast %10 : vector<1x96xf32> to vector<32x96xf32>
    %12 = arith.addf %9, %11 : vector<32x96xf32>
    %13 = tpu.iota {dimensions = array<i32: 1>} : vector<32x96xi32>
    %c64_i32 = arith.constant 64 : i32
    %14 = vector.broadcast %c64_i32 : i32 to vector<32x96xi32>
    %15 = arith.cmpi slt, %13, %14 : vector<32x96xi32>
    %cst_11 = arith.constant 0.000000e+00 : f32
    %16 = vector.broadcast %cst_11 : f32 to vector<32x96xf32>
    %17 = arith.maximumf %12, %16 : vector<32x96xf32>
    %18 = arith.select %15, %17, %12 : vector<32x96xi1>, vector<32x96xf32>
    %cst_12 = arith.constant 0.000000e+00 : f32
    %19 = vector.broadcast %cst_12 : f32 to vector<32x128xf32>
    %c0_13 = arith.constant 0 : index
    %c0_14 = arith.constant 0 : index
    %20 = vector.load %arg7[%c0_13, %c0_14] : memref<32x128xf32, #tpu.memory_space<vmem>>, vector<32x128xf32>
    tpu.vector_store %arg7[%c0_13, %c0_14], %19 {strides = array<i32>} : memref<32x128xf32, #tpu.memory_space<vmem>>, vector<32x128xf32>,
    %c0_15 = arith.constant 0 : index
    %c0_16 = arith.constant 0 : index
    %21 = vector.load %arg7[%c0_15, %c0_16] : memref<32x128xf32, #tpu.memory_space<vmem>>, vector<32x96xf32>
    tpu.vector_store %arg7[%c0_15, %c0_16], %18 {strides = array<i32>} : memref<32x128xf32, #tpu.memory_space<vmem>>, vector<32x96xf32>,
    %c0_17 = arith.constant 0 : index
    %c0_18 = arith.constant 0 : index
    %22 = vector.load %arg2[%c0_17, %c0_18] : memref<32x3xf32, #tpu.memory_space<vmem>>, vector<32x3xf32>
    %c0_19 = arith.constant 0 : index
    %c96 = arith.constant 96 : index
    %23 = vector.load %arg7[%c0_19, %c96] : memref<32x128xf32, #tpu.memory_space<vmem>>, vector<32x3xf32>
    tpu.vector_store %arg7[%c0_19, %c96], %22 {strides = array<i32>} : memref<32x128xf32, #tpu.memory_space<vmem>>, vector<32x3xf32>,
    return
  }
  func.func @transform_0(%arg0: i32) -> (i32, i32) {
    %c0_i32 = arith.constant 0 : i32
    %c0_i32_0 = arith.constant 0 : i32
    return %arg0, %c0_i32 : i32, i32
  }
  func.func @transform_1(%arg0: i32) -> (i32, i32) {
    %c0_i32 = arith.constant 0 : i32
    %c0_i32_0 = arith.constant 0 : i32
    return %arg0, %c0_i32 : i32, i32
  }
  func.func @transform_2(%arg0: i32) -> (i32, i32) {
    %c0_i32 = arith.constant 0 : i32
    %c0_i32_0 = arith.constant 0 : i32
    %c0_i32_1 = arith.constant 0 : i32
    return %c0_i32, %c0_i32_0 : i32, i32
  }
  func.func @transform_3(%arg0: i32) -> (i32, i32) {
    %c0_i32 = arith.constant 0 : i32
    %c0_i32_0 = arith.constant 0 : i32
    %c0_i32_1 = arith.constant 0 : i32
    return %c0_i32, %c0_i32_0 : i32, i32
  }
  func.func @transform_4(%arg0: i32) -> (i32, i32) {
    %c0_i32 = arith.constant 0 : i32
    %c0_i32_0 = arith.constant 0 : i32
    %c0_i32_1 = arith.constant 0 : i32
    return %c0_i32, %c0_i32_0 : i32, i32
  }
  func.func @transform_5(%arg0: i32) -> (i32, i32) {
    %c0_i32 = arith.constant 0 : i32
    %c0_i32_0 = arith.constant 0 : i32
    %c0_i32_1 = arith.constant 0 : i32
    return %c0_i32, %c0_i32_0 : i32, i32
  }
  func.func @transform_6(%arg0: i32) -> (i32, i32) {
    %c0_i32 = arith.constant 0 : i32
    %c0_i32_0 = arith.constant 0 : i32
    return %arg0, %c0_i32 : i32, i32
  }
}

</mosaic_0001>

<bundles_post_ra>
// kernel: tpu_custom_call.1
= control target key start
LH: loop header
LB: loop body
LE: loop exit
PB: predicated region body
PF: predicated region fallthrough
CT: control target
= control target key end

     0   :  { %11 = vsyncpa [#allocation3], 0  ;;  %s1039_s0 = inlined_call_operand.vmem [shape: f32[64,32], index: 0, kind: input, shape index: {}]   ;;  %s1040_s1 = inlined_call_operand.vmem [shape: f32[64,3], index: 1, kind: input, shape index: {}]   ;;  %s1041_s2 = inlined_call_operand.vmem [shape: f32[32,32], index: 2, kind: input, shape index: {}]   ;;  %s1042_s3 = inlined_call_operand.vmem [shape: f32[1,32], index: 3, kind: input, shape index: {}]   ;;  %s1043_s4 = inlined_call_operand.vmem [shape: f32[32,96], index: 4, kind: input, shape index: {}]   ;;  %s1044_s5 = inlined_call_operand.vmem [shape: f32[1,96], index: 5, kind: input, shape index: {}]   ;;  %s1045_s6 = inlined_call_operand.hbm [shape: f32[64,128], index: 6, kind: output, shape index: {}]  }
   0x1   :  { %13 = vsyncpa [#allocation3 + $0x1], 0  ;;  %s865_s21 = smov 0   ;;  %s867_s22 = smov 0  }
   0x2   :  { %s869_s23 = smov 0   ;;  %s871_s24 = smov 0  }
   0x3 LB: > { %s886_s25 = sadd.s32 4294967295, %s823_s24   ;;  %s633_s26 = sadd.s32 4294967294, %s823_s24   ;;  %s823_s24 = sphi %s871_s24, %s1051_s24   ;;  %s819_s23 = sphi %s869_s23, %s1050_s23   ;;  %s815_s22 = sphi %s867_s22, %s1049_s22   ;;  %s811_s21 = sphi %s865_s21, %s1048_s21  }
   0x4   : > { %s890_s27 = sadd.s32 1, %s823_s24   ;;  %s162_s28 = sadd.s32 1, %s819_s23 }
   0x5   : > { %s159_s29 = ssub.s32 %s823_s24, %s890_s27  ;;  %p172_p0 = scmp.ne.s32.totalorder %s819_s23, %s815_s22 }
   0x6   : > { %p160_p1 = scmp.eq.s32.totalorder %s159_s29, 0  ;;  %p173_p2 = scmp.eq.s32.totalorder %s886_s25, 1 }
   0x7   : > { %p178_p3 = scmp.ne.s32.totalorder %s815_s22, %s811_s21  ;;  %p179_p4 = scmp.eq.s32.totalorder %s633_s26, 1 }
   0x8   : > { %s901_s30 = scalar_select %p160_p1, %s819_s23, %s162_s28  }
   0x9   : > { %p903_p5 = por %p173_p2, %p172_p0  ;;  %p907_p6 = por %p179_p4, %p178_p3 }
   0xa   : > { %p636_p7 = scmp.ge.s32.totalorder %s823_s24, 1  ;;  %p227_p8 = scmp.lt.s32.totalorder %s823_s24, 3 }
   0xc   : > { %p228_p9 = pnand %p636_p7, %p227_p8 }
   0xd   : > { %v279_v0 = vld [vmem:[%s1041_s2] sm:$0xff] (!%p228_p9)  ;;  %v280_v1 = vld [vmem:[%s1041_s2 + $0x8] sm:$0xff] (!%p228_p9)  ;;  %v281_v2 = vld [vmem:[%s1041_s2 + $0x10] sm:$0xff] (!%p228_p9)  ;;  %s638_s15 = sshll.u32 (!%p228_p9), %s886_s25, 2  ;;  %vm290_vm0 = vcmask (!%p228_p9), 261120   ;;  %s825_s18 = smov (!%p228_p9), 96   ;;  %v500_v34 = vlaneseq (!%p228_p9) }
   0xe   : > { %231 = sbr.rel (%p228_p9) target bundleno = 482 (0x1e2), region = 44  ;;  %v702_v3 = vpack.c.bf16 (!%p228_p9), %v280_v1, %v279_v0  ;;  %v282_v4 = vld [vmem:[%s1041_s2 + $0x18] sm:$0xff] (!%p228_p9)  ;;  %p263_p10 = scmp.lt.s32.totalorder (!%p228_p9), %s638_s15, 7  ;;  %v392_v5 = vld [vmem:[%s1043_s4] sm:$0xff] (!%p228_p9)  ;;  %v393_v6 = vld [vmem:[%s1043_s4 + $0x8] sm:$0xff] (!%p228_p9)  ;;  %v826_v33 = vmov (!%p228_p9), 0.0  }
   0xf   : > { %v706_v7 = vpack.c.bf16 (!%p228_p9), %v282_v4, %v281_v2  ;;  %v710_v8 = vpack.c.bf16 (!%p228_p9), %v393_v6, %v392_v5  ;;  %v394_v13 = vld [vmem:[%s1043_s4 + $0x10] sm:$0xff] (!%p228_p9)  ;;  %v395_v14 = vld [vmem:[%s1043_s4 + $0x18] sm:$0xff] (!%p228_p9)  ;;  %v642_v20 = vld [vmem:[%s1042_s3] ss:$0 sm:$0xff] (!%p228_p9)  ;;  %s259_s26 = sand.u32 (!%p228_p9), 1, %s815_s22   ;;  %v501_v36 = vand.u32 (!%p228_p9), 127, %v500_v34 }
  0x10   : > { %703 = vmatprep.subr.bf16.mxu0 (!%p228_p9), %v702_v3  ;;  %v714_v15 = vpack.c.bf16 (!%p228_p9), %v395_v14, %v394_v13  ;;  %v647_v35 = vld [vmem:[%s1044_s5] ss:$0 sm:$0xff] (!%p228_p9)  ;;  %vm515_vm2 = vcmask (!%p228_p9), 785408   ;;  %vm540_vm3 = vcmask (!%p228_p9), 810752   ;;  %s657_s11 = sshll.u32 (!%p228_p9), %s886_s25, 9  ;;  %s998_s25 = scalar_lea.sflag (!%p228_p9), [#allocation3], %s259_s26 }
  0x11   : > { %705 = vmatpush3.bf16.msra.mxu0 (!%p228_p9), %v702_v3  ;;  %711 = vmatprep.subr.bf16.mxu1 (!%p228_p9), %v710_v8  ;;  %vm502_vm1 = vcmp.lt.s32.totalorder (!%p228_p9), %v501_v36, 64 }
  0x12   : > { %707 = vmatprep.subr.bf16.mxu0 (!%p228_p9), %v706_v7  ;;  %713 = vmatpush3.bf16.msra.mxu1 (!%p228_p9), %v710_v8 }
  0x13   : > { %715 = vmatprep.subr.bf16.mxu1 (!%p228_p9), %v714_v15 }
  0x15   : > { %s1053_s15 = smov (!%p263_p10, %s638_s15), 7  ;;  %709 = vmatpush3.bf16.msra.mxu0 %v706_v7 }
  0x16   : > { %s639_s28 = sshll.u32 %s1053_s15, 3  ;;  %717 = vmatpush3.bf16.msra.mxu1 %v714_v15  ;;  %s983_s15 = scalar_lea.hbm %s1045_s6, %s657_s11 }
  0x17   : > { %s266_s10 = scalar_lea.vmem %s1039_s0, %s639_s28  ;;  %s272_s17 = scalar_lea.vmem %s1040_s1, %s639_s28 }
  0x18   : > { %v275_v9 = vld [vmem:[%s266_s10] sm:$0xff]  ;;  %v276_v10 = vld [vmem:[%s266_s10 + $0x8] sm:$0xff]  ;;  %v277_v11 = vld [vmem:[%s266_s10 + $0x10] sm:$0xff]  ;;  %s637_s28 = sshll.u32 %s259_s26, 5 }
  0x19   : > { %682 = vmatprep.mubr.msk.f32.mxu0 %vm290_vm0, %v275_v9  ;;  %v278_v12 = vld [vmem:[%s266_s10 + $0x18] sm:$0xff]  ;;  %v522_v16 = vld [vmem:[%s272_s17 + $0x10] sm:$0xff]  ;;  %v520_v17 = vld [vmem:[%s272_s17] sm:$0xff]  ;;  %s958_s29 = scalar_lea.vmem [#allocation2], %s637_s28 }
  0x1a   : > { %683 = vmatmul.mubr.msk.f32.vlgmr.msra.gmra.mrb[0].mxu0 %vm290_vm0, %v276_v10  ;;  %532 = vrot.lane.b32.xlu1 %v522_v16, %s825_s18  ;;  %v523_v18 = vld [vmem:[%s272_s17 + $0x18] sm:$0xff]  ;;  %v521_v19 = vld [vmem:[%s272_s17 + $0x8] sm:$0xff]  ;;  %513 = vst [vmem:[%s958_s29 + $0x10] sm:$0xff] %v826_v33  ;;  %s559_s12 = sshll.u32 %s958_s29, 4  ;;  %s827_s17 = smov [#allocation2]   ;;  %s985_s12 = int_to_ptr.vmem [resolvable:$true] %s559_s12 }
  0x1b   : > { %685 = vmatprep.mubr.msk.f32.mxu0 %vm290_vm0, %v277_v11  ;;  %528 = vrot.lane.b32.xlu0 %v520_v17, %s825_s18  ;;  %511 = vst [vmem:[%s958_s29] sm:$0xff] %v826_v33  ;;  %512 = vst [vmem:[%s958_s29 + $0x8] sm:$0xff] %v826_v33  ;;  %s761_s16 = scalar_lea.vmem %s985_s12, 512 }
  0x1c   : > { %514 = vst [vmem:[%s958_s29 + $0x18] sm:$0xff] %v826_v33  ;;  %p762_p11 = scmp.ne.s32.totalorder %s985_s12, %s761_s16 }
  0x1e   : > { %686 = vmatmul.mubr.msk.f32.gmra.mrb[2].mxu0 %vm290_vm0, %v278_v12  ;;  %534 = vrot.lane.b32.xlu1 %v523_v18, %s825_s18  ;;  %p763_p12 = pnand %p762_p11, %p903_p5 }
  0x1f   : > { %530 = vrot.lane.b32.xlu0 %v521_v19, %s825_s18  ;;  %s765_s18 = sshll.u32 %s827_s17, 4  ;;  %s766_s18 = int_to_ptr.vmem [resolvable:$false] %s765_s18 }
  0x20   : > { %p764_p13 = pneg %p763_p12  ;;  %s767_s19 = scalar_lea.vmem %s766_s18, 1024 }
  0x21   : > { %p768_p0 = scmp.lt.s32.totalorder %s985_s12, %s766_s18  ;;  %p769_p1 = scmp.lt.s32.totalorder %s767_s19, %s761_s16 }
  0x23   : > { %p770_p2 = por %p769_p1, %p768_p0 }
  0x25   : > { %p771_p3 = pnand %p770_p2, %p764_p13 }
  0x8c   : > { %v533_v42 = vpop.permute.xlu1 %532 }
  0x8d   : > { %v529_v37 = vpop.permute.xlu0 %528 }
  0x90   : > { %v535_v54 = vpop.permute.xlu1 %534 }
  0x91   : > { %v531_v46 = vpop.permute.xlu0 %530 }
  0xed   : > { %v684_v21 = vpop.f32.mrb[0].mxu0 }
  0xee   : > { %v375_v22 = vadd.f32 %v684_v21, %v642_v20  ;;  %v369_v23 = vpop.f32.mrb[1].mxu0 }
  0xef   : > { %v370_v24 = vadd.f32 %v642_v20, %v369_v23 }
  0xf0   : > { %v389_v27 = vmax.f32 %v375_v22, 0.0 }
  0xf1   : > { %v388_v25 = vmax.f32 %v370_v24, 0.0  ;;  %v687_v26 = vpop.f32.mrb[2].mxu0 }
  0xf2   : > { %v385_v28 = vadd.f32 %v687_v26, %v642_v20  ;;  %v379_v29 = vpop.f32.mrb[3].mxu0 }
  0xf3   : > { %v380_v30 = vadd.f32 %v642_v20, %v379_v29  ;;  %696 = vmatprep.mubr.msk.f32.mxu1 %vm290_vm0, %v388_v25 }
  0xf4   : > { %697 = vmatmul.mubr.msk.f32.vlgmr.msra.gmra.mrb[0].mxu1 %vm290_vm0, %v389_v27  ;;  %v391_v32 = vmax.f32 %v385_v28, 0.0 }
  0xf5   : > { %v390_v31 = vmax.f32 %v380_v30, 0.0 }
  0xf7   : > { %699 = vmatprep.mubr.msk.f32.mxu1 %vm290_vm0, %v390_v31 }
  0xf8   : > { %700 = vmatmul.mubr.msk.f32.gmra.mrb[2].mxu1 %vm290_vm0, %v391_v32 }
 0x1c7   : > { %v698_v38 = vpop.f32.mrb[0].mxu1 }
 0x1c8   : > { %v487_v39 = vadd.f32 %v698_v38, %v647_v35  ;;  %v481_v40 = vpop.f32.mrb[1].mxu1 }
 0x1c9   : > { %v482_v41 = vadd.f32 %v647_v35, %v481_v40 }
 0x1ca   : > { %v504_v43 = vmax.f32 %v487_v39, 0.0 }
 0x1cb   : > { %v503_v44 = vmax.f32 %v482_v41, 0.0  ;;  %v701_v45 = vpop.f32.mrb[2].mxu1 }
 0x1cc   : > { %v508_v47 = vsel %vm502_vm1, %v504_v43, %v487_v39  ;;  %v497_v48 = vadd.f32 %v701_v45, %v647_v35  ;;  %v491_v49 = vpop.f32.mrb[3].mxu1 }
 0x1cd   : > { %v507_v50 = vsel %vm502_vm1, %v503_v44, %v482_v41  ;;  %v492_v51 = vadd.f32 %v647_v35, %v491_v49  ;;  %517 = vst.msk [vmem:[%s958_s29 + $0x8] sm:$0xff] %vm515_vm2, %v508_v47 }
 0x1ce   : > { %v506_v52 = vmax.f32 %v497_v48, 0.0  ;;  %516 = vst.msk [vmem:[%s958_s29] sm:$0xff] %vm515_vm2, %v507_v50 }
 0x1cf   : > { %542 = vst.msk [vmem:[%s958_s29 + $0x8] sm:$0xff] %vm540_vm3, %v531_v46  ;;  %v505_v53 = vmax.f32 %v492_v51, 0.0  ;;  %541 = vst.msk [vmem:[%s958_s29] sm:$0xff] %vm540_vm3, %v529_v37 }
 0x1d0   : > { %v510_v55 = vsel %vm502_vm1, %v506_v52, %v497_v48 }
 0x1d1   : > { %v509_v56 = vsel %vm502_vm1, %v505_v53, %v492_v51  ;;  %519 = vst.msk [vmem:[%s958_s29 + $0x18] sm:$0xff] %vm515_vm2, %v510_v55 }
 0x1d2   : > { %518 = vst.msk [vmem:[%s958_s29 + $0x10] sm:$0xff] %vm515_vm2, %v509_v56 }
 0x1d3   : > { %544 = vst.msk [vmem:[%s958_s29 + $0x18] sm:$0xff] %vm540_vm3, %v535_v54  ;;  %543 = vst.msk [vmem:[%s958_s29 + $0x10] sm:$0xff] %vm540_vm3, %v533_v42 }
 0x1d4   : > { %774 = shalt.err (!%p771_p3)
}
 0x1d5   : > { %s775_s20 = scalar_lea.hbm %s983_s15, 512  ;;  %s779_s29 = scalar_lea.hbm %s1045_s6, 1024 }
 0x1d6   : > { %p776_p4 = scmp.ne.s32.totalorder %s983_s15, %s775_s20  ;;  %p780_p9 = scmp.lt.u32.totalorder %s983_s15, %s1045_s6 }
 0x1d7   : > { %p781_p10 = scmp.lt.u32.totalorder %s779_s29, %s775_s20  ;;  %p783_p12 = scmp.lt.u32.totalorder %s775_s20, %s983_s15 }
 0x1d8   : > { %p777_p7 = pnand %p776_p4, %p903_p5 }
 0x1d9   : > { %p782_p11 = por %p781_p10, %p780_p9 }
 0x1da   : > { %p778_p8 = pneg %p777_p7 }
 0x1db   : > { %p784_p13 = por %p783_p12, %p782_p11 }
 0x1dd   : > { %p785_p0 = pnand %p784_p13, %p778_p8 }
 0x1df   : > { %788 = shalt.err (!%p785_p0)
}
 0x1e0   : > { %s828_s11 = smov 128   ;;  %s829_s13 = smov 8  }
 0x1e1   : > { %718 = dma.vmem_to_hbm [thread:$0]  (%p903_p5), %s985_s12, 512, %s983_s15, %s998_s25, %s828_s11, %s828_s11, %s829_s13  }
 0x1e2 PF: > { %p724_p1 = scmp.ge.s32.totalorder %s823_s24, 2  ;;  %s574_s14 = sand.u32 1, %s811_s21  }
 0x1e3   : > { %s575_s16 = scalar_lea.sflag [#allocation3], %s574_s14 }
 0x1e4   : > { %p721_p2 = pnand %p724_p1, %p907_p6 }
 0x1e6   : > { %806 = dma.done.wait (!%p721_p2), %s575_s16, 512  }
 0x1e7   : > { %808 = vsyncadd (!%p721_p2), %s575_s16, 4294966784  ;;  %p16_p3 = scmp.ge.s32.totalorder %s890_s27, 4   ;;  %s1048_s21 = smov %s815_s22 }
 0x1e8   : > { %s1049_s22 = smov %s819_s23  ;;  %s1050_s23 = smov %s901_s30 }
 0x1e9   : > { %s1051_s24 = smov %s890_s27  ;;  %18 = sbr.rel (!%p16_p3) target bundleno = 3 (0x3), region = 82 }
 0x1f0   :  { %580 = vsyncpa [#allocation3], 1 }
 0x1f1   :  { %582 = vsyncpa [#allocation3 + $0x1], 1 }

</bundles_post_ra>
